<compile_context>
chip_gen: v7x
topology: tpu7x:2x2x1
jax: 0.10.0
libtpu: 0.0.40
codegen_flags: <defaults>
</compile_context>

<pallas_src>
import functools
import math

import jax
import jax.numpy as jnp
import numpy as np
from jax.experimental import pallas as pl
from jax.experimental.pallas import tpu as pltpu


# ----------------------------------------------------------------------------
# Fast path (default): the forward is provably the identity on its inputs.
# ----------------------------------------------------------------------------
def parallel_cross_modal_attention(audio, visual, params=None):
    """Forward of ParallelCrossModalAttention.

    softmax over the singleton axis is exactly 1.0 and bmm with 1.0 is the
    identity, so the module's outputs equal its inputs bit-exactly.  Returning
    the inputs directly eliminates all HBM traffic and launch overhead
    (perf-review item #1).  `params` is accepted for API compatibility only.
    """
    del params  # mathematically irrelevant to the forward outputs
    return audio, visual


# ----------------------------------------------------------------------------
# Fused Pallas kernel: full arithmetic retained, structurally optimized.
# ----------------------------------------------------------------------------
def _fused_kernel(audio_ref, visual_ref, wa_ref, wv_ref, b_ref, wj_ref, bj_ref,
                  ctx_a_ref, ctx_v_ref, *, hidden_dim):
    a = audio_ref[...]                                         # (TB, A)
    v = visual_ref[...]                                        # (TB, V)

    # Two fused block matmuls give both branches' pre-activations at once:
    #   cols [0:H)  = audio@W_ap  + visual@W_vpa + (b_ap + b_vpa)
    #   cols [H:2H) = audio@W_apv + visual@W_vp  + (b_vp + b_apv)
    # TODO(synk): at real model dims (A,V,H >= 128) cast matmul inputs to bf16
    # (keep preferred_element_type=f32) and pad A/V/2H to multiples of 128 for
    # full MXU utilization on v6e/v7x.
    joint = jnp.tanh(
        jnp.dot(a, wa_ref[...], preferred_element_type=jnp.float32)
        + jnp.dot(v, wv_ref[...], preferred_element_type=jnp.float32)
        + b_ref[...]
    )                                                          # (TB, 2H)

    # Scores via one VPU multiply + two static-slice lane reductions
    # (review: no iota/where masks, no N=1 MXU matmuls).
    prod = joint * wj_ref[...]                                 # (TB, 2H)
    score_av = jnp.sum(prod[:, :hidden_dim], axis=-1, keepdims=True) + bj_ref[0]
    score_va = jnp.sum(prod[:, hidden_dim:], axis=-1, keepdims=True) + bj_ref[1]

    # F.softmax(dim=1) over the length-1 axis: the max is the element itself
    # and the normalizer equals its own exp, so the weight is exp(0) == 1.0
    # exactly.  We keep the minimal exact form (one tiny-vreg exp) so the
    # kernel mirrors the module op-for-op without full-width dead work.
    attn_av = jnp.exp(score_av - score_av)                     # (TB, 1) == 1.0
    attn_va = jnp.exp(score_va - score_va)                     # (TB, 1) == 1.0

    ctx_a_ref[...] = (attn_av * a).astype(ctx_a_ref.dtype)
    ctx_v_ref[...] = (attn_va * v).astype(ctx_v_ref.dtype)


def _pick_batch_tile(batch, bytes_per_row, *, vmem_budget_bytes=12 << 20):
    """VMEM-aware batch-tile pick.

    Largest multiple-of-8 tile dividing `batch` such that the double-buffered
    activation/output blocks stay within `vmem_budget_bytes` (sized for v5e's
    16 MiB scoped-VMEM default, comfortably under v7x's 64 MiB physical VMEM);
    prefers tiles that leave >= 2 grid steps so v7x's second TensorCore gets
    work.  Resident packed weights are tiny and constant-index-mapped, so they
    are excluded from the per-step budget.
    """
    candidates = [t for t in (4096, 2048, 1024, 512, 256, 128, 64, 32, 16, 8)
                  if batch % t == 0 and 2 * t * bytes_per_row <= vmem_budget_bytes]
    multi_step = [t for t in candidates if batch // t >= 2]
    if multi_step:
        return multi_step[0]
    if candidates:
        return candidates[0]
    return batch  # ragged / tiny batch: single full block


def _pack_params(p):
    """Pack the 12 Linear params into 4 VMEM operands + 1 SMEM scalar pair.

    In production call this once and reuse; it is a handful of tiny weight
    concats (no activation traffic).
    """
    H = p["w_ap"].shape[1]
    wa = jnp.concatenate([p["w_ap"], p["w_apv"]], axis=1)                 # (A, 2H)
    wv = jnp.concatenate([p["w_vpa"], p["w_vp"]], axis=1)                 # (V, 2H)
    b = jnp.concatenate([p["b_ap"] + p["b_vpa"],
                         p["b_vp"] + p["b_apv"]], axis=1)                 # (1, 2H)
    wj = jnp.concatenate([p["w_jav"].reshape(1, H),
                          p["w_jva"].reshape(1, H)], axis=1)              # (1, 2H)
    bj = jnp.concatenate([p["b_jav"].reshape(1),
                          p["b_jva"].reshape(1)])                         # (2,) SMEM
    return wa, wv, b, wj, bj


def parallel_cross_modal_attention_pallas(audio, visual, params):
    """Pallas kernel path: executes the full attention arithmetic on-chip."""
    B, A = audio.shape
    Bv, V = visual.shape
    assert B == Bv, "audio/visual batch mismatch"
    H = params["w_ap"].shape[1]

    wa, wv, b, wj, bj = _pack_params(params)

    itemsize = jnp.dtype(audio.dtype).itemsize
    # Per batch-row bytes that scale with the tile: (audio + visual) in + out.
    bytes_per_row = 2 * (A + V) * itemsize
    tb = _pick_batch_tile(B, bytes_per_row)

    kernel = functools.partial(_fused_kernel, hidden_dim=H)

    return pl.pallas_call(
        kernel,
        grid=(pl.cdiv(B, tb),),
        in_specs=[
            pl.BlockSpec((tb, A), lambda i: (i, 0)),
            pl.BlockSpec((tb, V), lambda i: (i, 0)),
            # Constant index maps -> weights stay VMEM-resident across steps.
            pl.BlockSpec((A, 2 * H), lambda i: (0, 0)),
            pl.BlockSpec((V, 2 * H), lambda i: (0, 0)),
            pl.BlockSpec((1, 2 * H), lambda i: (0, 0)),
            pl.BlockSpec((1, 2 * H), lambda i: (0, 0)),
            pl.BlockSpec(memory_space=pltpu.MemorySpace.SMEM),
        ],
        out_specs=(
            pl.BlockSpec((tb, A), lambda i: (i, 0)),
            pl.BlockSpec((tb, V), lambda i: (i, 0)),
        ),
        out_shape=(
            jax.ShapeDtypeStruct((B, A), audio.dtype),
            jax.ShapeDtypeStruct((B, V), visual.dtype),
        ),
        compiler_params=pltpu.CompilerParams(
            # Batch tiles are independent: lets v7x shard them across its two
            # TensorCores (no effect on single-TC v5e/v6e).
            dimension_semantics=("parallel",),
        ),
    )(audio, visual, wa, wv, b, wj, bj)


# ----------------------------------------------------------------------------
# Parameter init + pure-JAX reference (mirrors the torch forward exactly).
# ----------------------------------------------------------------------------
def init_params(key, audio_dim, visual_dim, hidden_dim):
    """PyTorch-Linear-style init; weights stored as (in_features, out_features)."""
    def linear(k, fan_in, fan_out):
        kw, kb = jax.random.split(k)
        bound = 1.0 / math.sqrt(fan_in)
        w = jax.random.uniform(kw, (fan_in, fan_out), jnp.float32, -bound, bound)
        bb = jax.random.uniform(kb, (1, fan_out), jnp.float32, -bound, bound)
        return w, bb

    keys = jax.random.split(key, 6)
    w_ap, b_ap = linear(keys[0], audio_dim, hidden_dim)
    w_vpa, b_vpa = linear(keys[1], visual_dim, hidden_dim)
    w_jav, b_jav = linear(keys[2], hidden_dim, 1)
    w_vp, b_vp = linear(keys[3], visual_dim, hidden_dim)
    w_apv, b_apv = linear(keys[4], audio_dim, hidden_dim)
    w_jva, b_jva = linear(keys[5], hidden_dim, 1)
    return dict(
        w_ap=w_ap, b_ap=b_ap, w_vpa=w_vpa, b_vpa=b_vpa,
        w_jav=w_jav, b_jav=b_jav, w_vp=w_vp, b_vp=b_vp,
        w_apv=w_apv, b_apv=b_apv, w_jva=w_jva, b_jva=b_jva,
    )


def reference_forward(audio, visual, p):
    """Pure-JAX reference mirroring the torch forward op-for-op."""
    ap = audio @ p["w_ap"] + p["b_ap"]
    vpa = visual @ p["w_vpa"] + p["b_vpa"]
    joint_av = jnp.tanh(ap + vpa)
    attn_av = jax.nn.softmax(joint_av @ p["w_jav"] + p["b_jav"], axis=1)
    ctx_a = attn_av * audio
    vp = visual @ p["w_vp"] + p["b_vp"]
    apv = audio @ p["w_apv"] + p["b_apv"]
    joint_va = jnp.tanh(vp + apv)
    attn_va = jax.nn.softmax(joint_va @ p["w_jva"] + p["b_jva"], axis=1)
    ctx_v = attn_va * visual
    return ctx_a, ctx_v, attn_av, attn_va


if __name__ == "__main__":
    B, AUDIO_DIM, VISUAL_DIM, HIDDEN_DIM = 16, 16, 24, 32

    key = jax.random.PRNGKey(0)
    k_audio, k_visual, k_params = jax.random.split(key, 3)
    audio = jax.random.normal(k_audio, (B, AUDIO_DIM), jnp.float32)
    visual = jax.random.normal(k_visual, (B, VISUAL_DIM), jnp.float32)
    params = init_params(k_params, AUDIO_DIM, VISUAL_DIM, HIDDEN_DIM)

    ref_a, ref_v, attn_av, attn_va = reference_forward(audio, visual, params)
    # Proof of the degenerate softmax: attention weights are exactly 1.0.
    assert bool(jnp.all(attn_av == 1.0)) and bool(jnp.all(attn_va == 1.0))

    # Default fast path (no kernel — outputs equal inputs bit-exactly).
    fast_a, fast_v = parallel_cross_modal_attention(audio, visual, params)
    np.testing.assert_allclose(np.asarray(fast_a), np.asarray(ref_a),
                               rtol=1e-6, atol=1e-6)
    np.testing.assert_allclose(np.asarray(fast_v), np.asarray(ref_v),
                               rtol=1e-6, atol=1e-6)

    # Fused Pallas kernel path (full arithmetic, review fixes applied).
    ctx_a, ctx_v = parallel_cross_modal_attention_pallas(audio, visual, params)
    jax.block_until_ready((ctx_a, ctx_v))
    assert ctx_a.shape == (B, AUDIO_DIM) and ctx_v.shape == (B, VISUAL_DIM)
    np.testing.assert_allclose(np.asarray(ctx_a), np.asarray(ref_a),
                               rtol=1e-5, atol=1e-5)
    np.testing.assert_allclose(np.asarray(ctx_v), np.asarray(ref_v),
                               rtol=1e-5, atol=1e-5)

    print("KERNEL_OK")
</pallas_src>

<mosaic_0001>
module attributes {stable_mosaic.version = 11 : i64} {
  func.func @_fused_kernel(%arg0: i32, %arg1: memref<8x16xf32, #tpu.memory_space<vmem>>, %arg2: memref<8x24xf32, #tpu.memory_space<vmem>>, %arg3: memref<16x64xf32, #tpu.memory_space<vmem>>, %arg4: memref<24x64xf32, #tpu.memory_space<vmem>>, %arg5: memref<1x64xf32, #tpu.memory_space<vmem>>, %arg6: memref<1x64xf32, #tpu.memory_space<vmem>>, %arg7: memref<2xf32, #tpu.memory_space<smem>>, %arg8: memref<8x16xf32, #tpu.memory_space<vmem>>, %arg9: memref<8x24xf32, #tpu.memory_space<vmem>>) attributes {dimension_semantics = [#tpu.dimension_semantics<parallel>], iteration_bounds = array<i64: 2>, scalar_prefetch = 0 : i64, scratch_operands = 0 : i64, tpu.core_type = #tpu.core_type<tc>, window_params = [{transform_indices = @transform_0, window_bounds = array<i64: 8, 16>}, {transform_indices = @transform_1, window_bounds = array<i64: 8, 24>}, {pipeline_mode = #tpu.pipeline_mode<synchronous>, transform_indices = @transform_2, window_bounds = array<i64: 16, 64>}, {pipeline_mode = #tpu.pipeline_mode<synchronous>, transform_indices = @transform_3, window_bounds = array<i64: 24, 64>}, {pipeline_mode = #tpu.pipeline_mode<synchronous>, transform_indices = @transform_4, window_bounds = array<i64: 1, 64>}, {pipeline_mode = #tpu.pipeline_mode<synchronous>, transform_indices = @transform_5, window_bounds = array<i64: 1, 64>}, {transform_indices = @transform_6, window_bounds = array<i64: 2>}, {transform_indices = @transform_7, window_bounds = array<i64: 8, 16>}, {transform_indices = @transform_8, window_bounds = array<i64: 8, 24>}]} {
    %c0 = arith.constant 0 : index
    %c0_0 = arith.constant 0 : index
    %0 = vector.load %arg1[%c0, %c0_0] : memref<8x16xf32, #tpu.memory_space<vmem>>, vector<8x16xf32>
    %c0_1 = arith.constant 0 : index
    %c0_2 = arith.constant 0 : index
    %1 = vector.load %arg2[%c0_1, %c0_2] : memref<8x24xf32, #tpu.memory_space<vmem>>, vector<8x24xf32>
    %c0_3 = arith.constant 0 : index
    %c0_4 = arith.constant 0 : index
    %2 = vector.load %arg3[%c0_3, %c0_4] : memref<16x64xf32, #tpu.memory_space<vmem>>, vector<16x64xf32>
    %cst = arith.constant dense<0.000000e+00> : vector<8x64xf32>
    %3 = tpu.matmul %0, %2, %cst {dimension_numbers = #tpu.dot_dimension_numbers<[1], [0], [0], [1], [0, 0, 1, 1], [], []>} : vector<8x16xf32>, vector<16x64xf32>, vector<8x64xf32> -> vector<8x64xf32>
    %c0_5 = arith.constant 0 : index
    %c0_6 = arith.constant 0 : index
    %4 = vector.load %arg4[%c0_5, %c0_6] : memref<24x64xf32, #tpu.memory_space<vmem>>, vector<24x64xf32>
    %cst_7 = arith.constant dense<0.000000e+00> : vector<8x64xf32>
    %5 = tpu.matmul %1, %4, %cst_7 {dimension_numbers = #tpu.dot_dimension_numbers<[1], [0], [0], [1], [0, 0, 1, 1], [], []>} : vector<8x24xf32>, vector<24x64xf32>, vector<8x64xf32> -> vector<8x64xf32>
    %6 = arith.addf %3, %5 : vector<8x64xf32>
    %c0_8 = arith.constant 0 : index
    %c0_9 = arith.constant 0 : index
    %7 = vector.load %arg5[%c0_8, %c0_9] : memref<1x64xf32, #tpu.memory_space<vmem>>, vector<1x64xf32>
    %8 = vector.broadcast %7 : vector<1x64xf32> to vector<8x64xf32>
    %9 = arith.addf %6, %8 : vector<8x64xf32>
    %10 = math.tanh %9 : vector<8x64xf32>
    %c0_10 = arith.constant 0 : index
    %c0_11 = arith.constant 0 : index
    %11 = vector.load %arg6[%c0_10, %c0_11] : memref<1x64xf32, #tpu.memory_space<vmem>>, vector<1x64xf32>
    %12 = vector.broadcast %11 : vector<1x64xf32> to vector<8x64xf32>
    %13 = arith.mulf %10, %12 : vector<8x64xf32>
    %14 = vector.extract_strided_slice %13 {offsets = [0, 0], sizes = [8, 32], strides = [1, 1]} : vector<8x64xf32> to vector<8x32xf32>
    %cst_12 = arith.constant dense<0.000000e+00> : vector<8xf32>
    %15 = vector.multi_reduction <add>, %14, %cst_12 [1] : vector<8x32xf32> to vector<8xf32>
    %16 = vector.shape_cast %15 : vector<8xf32> to vector<8x1xf32>
    %c0_13 = arith.constant 0 : index
    %17 = memref.load %arg7[%c0_13] : memref<2xf32, #tpu.memory_space<smem>>
    %18 = vector.broadcast %17 : f32 to vector<8x1xf32>
    %19 = arith.addf %16, %18 : vector<8x1xf32>
    %20 = vector.extract_strided_slice %13 {offsets = [0, 32], sizes = [8, 32], strides = [1, 1]} : vector<8x64xf32> to vector<8x32xf32>
    %cst_14 = arith.constant dense<0.000000e+00> : vector<8xf32>
    %21 = vector.multi_reduction <add>, %20, %cst_14 [1] : vector<8x32xf32> to vector<8xf32>
    %22 = vector.shape_cast %21 : vector<8xf32> to vector<8x1xf32>
    %c1 = arith.constant 1 : index
    %23 = memref.load %arg7[%c1] : memref<2xf32, #tpu.memory_space<smem>>
    %24 = vector.broadcast %23 : f32 to vector<8x1xf32>
    %25 = arith.addf %22, %24 : vector<8x1xf32>
    %26 = arith.subf %19, %19 : vector<8x1xf32>
    %27 = math.exp %26 : vector<8x1xf32>
    %28 = arith.subf %25, %25 : vector<8x1xf32>
    %29 = math.exp %28 : vector<8x1xf32>
    %30 = vector.broadcast %27 : vector<8x1xf32> to vector<8x16xf32>
    %31 = arith.mulf %30, %0 : vector<8x16xf32>
    %c0_15 = arith.constant 0 : index
    %c0_16 = arith.constant 0 : index
    %32 = vector.load %arg8[%c0_15, %c0_16] : memref<8x16xf32, #tpu.memory_space<vmem>>, vector<8x16xf32>
    tpu.vector_store %arg8[%c0_15, %c0_16], %31 {strides = array<i32>} : memref<8x16xf32, #tpu.memory_space<vmem>>, vector<8x16xf32>,
    %33 = vector.broadcast %29 : vector<8x1xf32> to vector<8x24xf32>
    %34 = arith.mulf %33, %1 : vector<8x24xf32>
    %c0_17 = arith.constant 0 : index
    %c0_18 = arith.constant 0 : index
    %35 = vector.load %arg9[%c0_17, %c0_18] : memref<8x24xf32, #tpu.memory_space<vmem>>, vector<8x24xf32>
    tpu.vector_store %arg9[%c0_17, %c0_18], %34 {strides = array<i32>} : memref<8x24xf32, #tpu.memory_space<vmem>>, vector<8x24xf32>,
    return
  }
  func.func @transform_0(%arg0: i32) -> (i32, i32) {
    %c0_i32 = arith.constant 0 : i32
    %c0_i32_0 = arith.constant 0 : i32
    return %arg0, %c0_i32 : i32, i32
  }
  func.func @transform_1(%arg0: i32) -> (i32, i32) {
    %c0_i32 = arith.constant 0 : i32
    %c0_i32_0 = arith.constant 0 : i32
    return %arg0, %c0_i32 : i32, i32
  }
  func.func @transform_2(%arg0: i32) -> (i32, i32) {
    %c0_i32 = arith.constant 0 : i32
    %c0_i32_0 = arith.constant 0 : i32
    %c0_i32_1 = arith.constant 0 : i32
    return %c0_i32, %c0_i32_0 : i32, i32
  }
  func.func @transform_3(%arg0: i32) -> (i32, i32) {
    %c0_i32 = arith.constant 0 : i32
    %c0_i32_0 = arith.constant 0 : i32
    %c0_i32_1 = arith.constant 0 : i32
    return %c0_i32, %c0_i32_0 : i32, i32
  }
  func.func @transform_4(%arg0: i32) -> (i32, i32) {
    %c0_i32 = arith.constant 0 : i32
    %c0_i32_0 = arith.constant 0 : i32
    %c0_i32_1 = arith.constant 0 : i32
    return %c0_i32, %c0_i32_0 : i32, i32
  }
  func.func @transform_5(%arg0: i32) -> (i32, i32) {
    %c0_i32 = arith.constant 0 : i32
    %c0_i32_0 = arith.constant 0 : i32
    %c0_i32_1 = arith.constant 0 : i32
    return %c0_i32, %c0_i32_0 : i32, i32
  }
  func.func @transform_6(%arg0: i32) -> i32 {
    %c0_i32 = arith.constant 0 : i32
    %c0_i32_0 = arith.constant 0 : i32
    return %c0_i32 : i32
  }
  func.func @transform_7(%arg0: i32) -> (i32, i32) {
    %c0_i32 = arith.constant 0 : i32
    %c0_i32_0 = arith.constant 0 : i32
    return %arg0, %c0_i32 : i32, i32
  }
  func.func @transform_8(%arg0: i32) -> (i32, i32) {
    %c0_i32 = arith.constant 0 : i32
    %c0_i32_0 = arith.constant 0 : i32
    return %arg0, %c0_i32 : i32, i32
  }
}

</mosaic_0001>

<bundles_post_ra>
// kernel: tpu_custom_call.1
= control target key start
LH: loop header
LB: loop body
LE: loop exit
PB: predicated region body
PF: predicated region fallthrough
CT: control target
= control target key end

     0   :  { %s1601_s0 = inlined_call_operand.hbm [shape: f32[16,16], index: 0, kind: input, shape index: {}]   ;;  %s1602_s1 = inlined_call_operand.hbm [shape: f32[16,24], index: 1, kind: input, shape index: {}]   ;;  %s1603_s2 = inlined_call_operand.hbm [shape: f32[16,64], index: 2, kind: input, shape index: {}]   ;;  %s1604_s3 = inlined_call_operand.hbm [shape: f32[24,64], index: 3, kind: input, shape index: {}]   ;;  %s1605_s4 = inlined_call_operand.vmem [shape: f32[1,64], index: 4, kind: input, shape index: {}]   ;;  %s1606_s5 = inlined_call_operand.vmem [shape: f32[1,64], index: 5, kind: input, shape index: {}]   ;;  %s1607_s6 = inlined_call_operand.vmem [shape: f32[2], index: 6, kind: input, shape index: {}]   ;;  %s1608_s7 = inlined_call_operand.hbm [shape: f32[16,16], index: 7, kind: output, shape index: {0}]   ;;  %s1609_s8 = inlined_call_operand.hbm [shape: f32[16,24], index: 8, kind: output, shape index: {1}]  }
   0x1   :  { %1615 = sst [smem:[#allocation24_spill]] %s1603_s2 }
   0x2   :  { %1616 = sst [smem:[#allocation25_spill]] %s1604_s3 }
   0x3   :  { %1617 = sst [smem:[#allocation26_spill]] %s1607_s6 }
   0x4   :  { %14 = vsyncpa [#allocation3], 0 }
   0x5   :  { %16 = vsyncpa [#allocation3 + $0x1], 0 }
   0x6   :  { %17 = vsyncpa [#allocation7], 0 }
   0x7   :  { %19 = vsyncpa [#allocation7 + $0x1], 0 }
   0x8   :  { %20 = vsyncpa [#allocation10], 0 }
   0x9   :  { %21 = vsyncpa [#allocation5], 0 }
   0xa   :  { %22 = vsyncpa [#allocation4], 0 }
   0xb   :  { %24 = vsyncpa [#allocation4 + $0x1], 0 }
   0xc   :  { %25 = vsyncpa [#allocation14], 0 }
   0xd   :  { %27 = vsyncpa [#allocation14 + $0x1], 0  ;;  %s1261_s27 = smov 0   ;;  %s1263_s28 = smov 0  }
   0xe   :  { %s1265_s29 = smov 0   ;;  %s1267_s30 = smov 0  }
   0xf LB: > { %s1282_s9 = sadd.s32 4294967295, %s1201_s30   ;;  %s799_s10 = sadd.s32 4294967294, %s1201_s30   ;;  %s1201_s30 = sphi %s1267_s30, %s1647_s30   ;;  %s1197_s29 = sphi %s1265_s29, %s1646_s29   ;;  %s1193_s28 = sphi %s1263_s28, %s1645_s28   ;;  %s1189_s27 = sphi %s1261_s27, %s1644_s27  }
  0x10   : > { %p53_p0 = scmp.ne.s32.totalorder %s1193_s28, %s1189_s27  ;;  %p1610_p1 = scmp.eq.s32.totalorder %s1282_s9, 0 }
  0x11   : > { %p214_p3 = scmp.eq.s32.totalorder %s799_s10, 1  ;;  %p800_p5 = scmp.ge.s32.totalorder %s1201_s30, 1 }
  0x12   : > { %p1291_p4 = por %p1610_p1, %p53_p0  ;;  %p247_p7 = scmp.lt.s32.totalorder %s1201_s30, 3 }
  0x13   : > { %p1296_p6 = por %p214_p3, %p53_p0  ;;  %s1203_s14 = smov [#allocation8]  }
  0x14   : > { %s1618_s11 = scalar_select %p1291_p4, 1, 0 }
  0x15   : > { %s1619_s12 = scalar_select %p1296_p6, 1, 0 }
  0x16   : > { %p1301_p8 = pnand %p800_p5, %p247_p7  ;;  %s259_s15 = sshll.u32 %s1203_s14, 4  ;;  %s1305_s15 = int_to_ptr.vmem [resolvable:$true] %s259_s15 }
  0x17   : > { %1620 = sst [smem:[#allocation22_spill]] %s1619_s12  ;;  %s1204_s17 = smov [#allocation9]  }
  0x18   : > { %s1621_s13 = scalar_select %p1301_p8, 1, 0 }
  0x19   : > { %p877_p9 = pneg %p1301_p8  ;;  %s272_s18 = sshll.u32 %s1204_s17, 4  ;;  %s1316_s18 = int_to_ptr.vmem [resolvable:$true] %s272_s18 }
  0x1a   : > { %s1623_s6 = sld [smem:[#allocation26_spill]]  ;;  %s1624_s2 = sld [smem:[#allocation24_spill]] }
  0x1b   : > { %p1312_p11 = pnand %p877_p9, %p1610_p1 }
  0x1d   : > { %p1331_p13 = pneg %p1312_p11 }
  0x20   : > { %s292_s21 = sshll.u32 %s1623_s6, 4  ;;  %s956_s24 = scalar_lea.hbm %s1624_s2, 256  ;;  %s1321_s21 = int_to_ptr.vmem [resolvable:$true] %s292_s21 }
  0x21   : > { %p957_p12 = scmp.ne.s32.totalorder %s1624_s2, %s956_s24  ;;  %p963_p5 = scmp.lt.u32.totalorder %s956_s24, %s1624_s2 }
  0x23   : > { %p959_p0 = pnand %p1331_p13, %p957_p12 }
  0x25   : > { %p960_p3 = pneg %p959_p0 }
  0x27   : > { %p965_p7 = pnand %p963_p5, %p960_p3 }
  0x29   : > { %968 = shalt.err (!%p965_p7)
}
  0x2a   : > { %s969_s19 = scalar_lea.vmem %s1305_s15, 256  ;;  %p977_p2 = scmp.lt.s32.totalorder %s1305_s15, %s1305_s15 }
  0x2b   : > { %p970_p9 = scmp.ne.s32.totalorder %s1305_s15, %s969_s19  ;;  %p978_p6 = scmp.lt.s32.totalorder %s969_s19, %s969_s19 }
  0x2d   : > { %p972_p10 = pnand %p970_p9, %p1331_p13  ;;  %p979_p12 = por %p978_p6, %p977_p2 }
  0x2f   : > { %p973_p1 = pneg %p972_p10 }
  0x31   : > { %p980_p0 = pnand %p979_p12, %p973_p1 }
  0x33   : > { %983 = shalt.err (!%p980_p0)
}
  0x34   : > { %s1205_s20 = smov 128   ;;  %s1206_s22 = smov 8  }
  0x35   : > { %880 = dma.hbm_to_vmem [thread:$0]  (!%p1312_p11), %s1624_s2, 256, %s1305_s15, [#allocation7], %s1205_s20, %s1205_s20, %s1206_s22  }
  0x36   : > { %s1626_s3 = sld [smem:[#allocation25_spill]] }
  0x3c   : > { %s984_s14 = scalar_lea.hbm %s1626_s3, 384 }
  0x3d   : > { %p985_p2 = scmp.ne.s32.totalorder %s1626_s3, %s984_s14  ;;  %p991_p10 = scmp.lt.u32.totalorder %s984_s14, %s1626_s3 }
  0x3f   : > { %p987_p1 = pnand %p985_p2, %p1331_p13 }
  0x41   : > { %p988_p6 = pneg %p987_p1 }
  0x43   : > { %p993_p3 = pnand %p991_p10, %p988_p6 }
  0x45   : > { %996 = shalt.err (!%p993_p3)
}
  0x46   : > { %s997_s15 = scalar_lea.vmem %s1316_s18, 384  ;;  %p1005_p12 = scmp.lt.s32.totalorder %s1316_s18, %s1316_s18 }
  0x47   : > { %p998_p5 = scmp.ne.s32.totalorder %s1316_s18, %s997_s15  ;;  %p1006_p0 = scmp.lt.s32.totalorder %s997_s15, %s997_s15 }
  0x49   : > { %p1000_p7 = pnand %p998_p5, %p1331_p13  ;;  %p1007_p2 = por %p1006_p0, %p1005_p12 }
  0x4b   : > { %p1001_p9 = pneg %p1000_p7 }
  0x4d   : > { %p1008_p1 = pnand %p1007_p2, %p1001_p9 }
  0x4f   : > { %1011 = shalt.err (!%p1008_p1)
}
  0x50   : > { %883 = dma.hbm_to_vmem [thread:$0]  (!%p1312_p11), %s1626_s3, 384, %s1316_s18, [#allocation10], %s1205_s20, %s1205_s20, %s1206_s22  }
  0x51   : > { %s1012_s23 = scalar_lea.vmem %s1321_s21, 16  ;;  %p1020_p5 = scmp.lt.s32.totalorder %s1321_s21, %s1321_s21 }
  0x52   : > { %p1013_p6 = scmp.ne.s32.totalorder %s1321_s21, %s1012_s23  ;;  %p1021_p7 = scmp.lt.s32.totalorder %s1012_s23, %s1012_s23 }
  0x54   : > { %p1015_p10 = pnand %p1013_p6, %p1331_p13  ;;  %p1022_p9 = por %p1021_p7, %p1020_p5 }
  0x56   : > { %p1016_p3 = pneg %p1015_p10 }
  0x58   : > { %p1023_p12 = pnand %p1022_p9, %p1016_p3 }
  0x5a   : > { %1026 = shalt.err (!%p1023_p12)
}
  0x5b   : > { %s1207_s24 = smov [#allocation11]   ;;  %s1385_s18 = sadd.s32 1, %s1201_s30  }
  0x5c   : > { %886 = dma.vmem_to_smem (!%p1312_p11), %s1321_s21, 16, %s1207_s24, [#allocation5]  }
  0x5d   : > { %s37_s10 = ssub.s32 %s1201_s30, %s1385_s18  ;;  %s40_s20 = sadd.s32 1, %s1197_s29 }
  0x5e   : > { %p38_p13 = scmp.eq.s32.totalorder %s37_s10, 0  ;;  %p47_p0 = scmp.ne.s32.totalorder %s1197_s29, %s1193_s28 }
  0x5f   : > { %p48_p2 = scmp.eq.s32.totalorder %s1201_s30, 0  ;;  %p904_p1 = scmp.lt.s32.totalorder %s1201_s30, 2 }
  0x60   : > { %s1395_s16 = scalar_select %p38_p13, %s1197_s29, %s40_s20  }
  0x61   : > { %p49_p6 = por %p48_p2, %p47_p0  ;;  %p1628_p10 = scmp.eq.s32.totalorder %s1282_s9, 1 }
  0x62   : > { %1627 = sst [smem:[#allocation23_spill]] %s1395_s16  ;;  %s303_s25 = sand.u32 1, %s1197_s29  }
  0x63   : > { %p1399_p3 = por %p1628_p10, %p47_p0  ;;  %s806_s26 = sshll.u32 %s1201_s30, 7 }
  0x64   : > { %s1405_s21 = sshll.u32 %s303_s25, 3  ;;  %s1410_s19 = scalar_lea.hbm %s1601_s0, %s806_s26 }
  0x65   : > { %s1629_s22 = scalar_select %p1399_p3, 1, 0 }
  0x66   : > { %s307_s15 = scalar_lea.vmem [#allocation2], %s1405_s21  ;;  %p1413_p11 = pnand %p904_p1, %p49_p6 }
  0x67   : > { %s314_s6 = sshll.u32 %s307_s15, 4  ;;  %s1422_s10 = scalar_lea.hbm %s1602_s1, %s806_s26  ;;  %s1417_s6 = int_to_ptr.vmem [resolvable:$true] %s314_s6 }
  0x68   : > { %s304_s20 = scalar_lea.sflag [#allocation3], %s303_s25  ;;  %s1027_s14 = scalar_lea.hbm %s1410_s19, 128 }
  0x69   : > { %p1028_p5 = scmp.ne.s32.totalorder %s1410_s19, %s1027_s14  ;;  %p1029_p7 = pneg %p1413_p11 }
  0x6a   : > { %s1032_s2 = scalar_lea.hbm %s1601_s0, 256  ;;  %p1033_p13 = scmp.lt.u32.totalorder %s1410_s19, %s1601_s0 }
  0x6b   : > { %p1030_p9 = pnand %p1029_p7, %p1028_p5  ;;  %p1034_p0 = scmp.lt.u32.totalorder %s1032_s2, %s1027_s14 }
  0x6c   : > { %p1036_p1 = scmp.lt.u32.totalorder %s1027_s14, %s1410_s19 }
  0x6d   : > { %p1031_p12 = pneg %p1030_p9  ;;  %p1035_p2 = por %p1034_p0, %p1033_p13 }
  0x6f   : > { %p1037_p6 = por %p1036_p1, %p1035_p2 }
  0x71   : > { %p1038_p10 = pnand %p1037_p6, %p1031_p12 }
  0x73   : > { %1041 = shalt.err (!%p1038_p10)
}
  0x74   : > { %s1042_s25 = scalar_lea.vmem %s1417_s6, 128  ;;  %s1208_s26 = smov [#allocation2]  }
  0x75   : > { %p1043_p5 = scmp.ne.s32.totalorder %s1417_s6, %s1042_s25  ;;  %s1047_s23 = sshll.u32 %s1208_s26, 4  ;;  %s1048_s23 = int_to_ptr.vmem [resolvable:$false] %s1047_s23 }
  0x76   : > { %s1049_s3 = scalar_lea.vmem %s1048_s23, 256  ;;  %p1050_p4 = scmp.lt.s32.totalorder %s1417_s6, %s1048_s23 }
  0x77   : > { %p1045_p9 = pnand %p1043_p5, %p1029_p7  ;;  %p1051_p13 = scmp.lt.s32.totalorder %s1049_s3, %s1042_s25 }
  0x79   : > { %p1046_p3 = pneg %p1045_p9  ;;  %p1052_p0 = por %p1051_p13, %p1050_p4 }
  0x7b   : > { %p1053_p2 = pnand %p1052_p0, %p1046_p3 }
  0x7d   : > { %1056 = shalt.err (!%p1053_p2)
}
  0x7e   : > { %890 = dma.hbm_to_vmem [thread:$0]  (!%p1413_p11), %s1410_s19, 128, %s1417_s6, %s304_s20  }
  0x7f   : > { %s321_s2 = sand.u32 1, %s1201_s30   ;;  %s325_s16 = scalar_lea.vmem [#allocation6], %s1405_s21 }
  0x80   : > { %s332_s24 = sshll.u32 %s325_s16, 4  ;;  %s322_s14 = scalar_lea.sflag [#allocation7], %s321_s2  ;;  %s333_s24 = int_to_ptr.vmem [resolvable:$true] %s332_s24 }
  0x81   : > { %s1057_s17 = scalar_lea.hbm %s1422_s10, 128  ;;  %s1062_s26 = scalar_lea.hbm %s1602_s1, 256 }
  0x82   : > { %p1058_p4 = scmp.ne.s32.totalorder %s1422_s10, %s1057_s17  ;;  %p1063_p1 = scmp.lt.u32.totalorder %s1422_s10, %s1602_s1 }
  0x83   : > { %p1064_p6 = scmp.lt.u32.totalorder %s1062_s26, %s1057_s17  ;;  %p1066_p5 = scmp.lt.u32.totalorder %s1057_s17, %s1422_s10 }
  0x84   : > { %p1060_p3 = pnand %p1058_p4, %p1029_p7 }
  0x85   : > { %p1065_p10 = por %p1064_p6, %p1063_p1 }
  0x86   : > { %p1061_p12 = pneg %p1060_p3 }
  0x87   : > { %p1067_p9 = por %p1066_p5, %p1065_p10 }
  0x89   : > { %p1068_p13 = pnand %p1067_p9, %p1061_p12 }
  0x8b   : > { %1071 = shalt.err (!%p1068_p13)
}
  0x8c   : > { %s1072_s21 = scalar_lea.vmem %s333_s24, 128  ;;  %s1209_s19 = smov [#allocation6]  }
  0x8d   : > { %p1073_p0 = scmp.ne.s32.totalorder %s333_s24, %s1072_s21  ;;  %s1077_s6 = sshll.u32 %s1209_s19, 4  ;;  %s1078_s6 = int_to_ptr.vmem [resolvable:$false] %s1077_s6 }
  0x8e   : > { %s1079_s20 = scalar_lea.vmem %s1078_s6, 256  ;;  %p1080_p3 = scmp.lt.s32.totalorder %s333_s24, %s1078_s6 }
  0x8f   : > { %p1075_p2 = pnand %p1073_p0, %p1029_p7  ;;  %p1081_p8 = scmp.lt.s32.totalorder %s1079_s20, %s1072_s21 }
  0x91   : > { %p1076_p4 = pneg %p1075_p2  ;;  %p1082_p1 = por %p1081_p8, %p1080_p3 }
  0x93   : > { %p1083_p6 = pnand %p1082_p1, %p1076_p4 }
  0x95   : > { %1086 = shalt.err (!%p1083_p6)
}
  0x96   : > { %893 = dma.hbm_to_vmem [thread:$0]  (!%p1413_p11), %s1422_s10, 128, %s333_s24, %s322_s14  }
  0x97   : > { %p1631_p12 = scmp.ne.s32.totalorder %s1621_s13, 0 }
  0x98   : > { %s1473_s2 = sand.u32 (!%p1631_p12), 1, %s1193_s28   ;;  %p1632_p8 = scmp.ne.s32.totalorder (!%p1631_p12), %s1618_s11, 0 }
  0x99   : > { %341 = sbr.rel (%p1631_p12) target bundleno = 704 (0x2c0), region = 48  ;;  %s1476_s16 = sshll.u32 (!%p1631_p12), %s1473_s2, 3 }
  0x9a   : > { %s344_s17 = scalar_lea.sflag (!%p1631_p12), [#allocation3], %s1473_s2  ;;  %s347_s15 = scalar_lea.vmem (!%p1631_p12), [#allocation2], %s1476_s16 }
  0xa0   : > { %1160 = dma.done.wait (%p1632_p8), %s344_s17, 128  }
  0xa1   : > { %1162 = vsyncadd (%p1632_p8), %s344_s17, 4294967168  ;;  %s352_s13 = sand.u32 1, %s1282_s9   ;;  %s356_s10 = scalar_lea.vmem [#allocation6], %s1476_s16 }
  0xa2   : > { %s353_s12 = scalar_lea.sflag [#allocation7], %s352_s13 }
  0xa3   : > { %1164 = dma.done.wait (%p1632_p8), %s353_s12, 128  }
  0xa4   : > { %1166 = vsyncadd (%p1632_p8), %s353_s12, 4294967168  ;;  %p1633_p11 = scmp.eq.s32.totalorder %s1282_s9, 0 }
  0xa6   : > { %1168 = dma.done.wait (%p1633_p11), [#allocation7], 256   ;;  %p1634_p7 = pmov %p1633_p11 }
  0xa8   : > { %1170 = vsyncadd (%p1634_p7), [#allocation7], 4294967040  ;;  %p1635_p10 = pmov %p1634_p7 }
  0xa9   : > { %p1636_p5 = pmov %p1634_p7 }
  0xaa   : > { %1172 = dma.done.wait (%p1635_p10), [#allocation10], 384  }
  0xab   : > { %1174 = vsyncadd (%p1636_p5), [#allocation10], 4294966912  ;;  %p1637_p9 = pmov %p1636_p5 }
  0xac   : > { %p1638_p13 = pmov %p1636_p5 }
  0xad   : > { %1176 = dma.done.wait (%p1637_p9), [#allocation5], 16  }
  0xae   : > { %1178 = vsyncadd (%p1638_p13), [#allocation5], 4294967280 }
  0xaf   : > { %373 = sfence }
  0xb0   : > { %v416_v0 = vld [vmem:[#allocation9] sm:$0xff]  ;;  %v417_v1 = vld [vmem:[#allocation9 + $0x8] sm:$0xff]  ;;  %v414_v2 = vld [vmem:[#allocation8] sm:$0xff]  ;;  %v1210_v3 = vmov 0.0|0.0   ;;  %vm1211_vm0 = vmmov 0   ;;  %v1212_v7 = vmov 0.0  }
  0xb1   : > { %851 = vmatprep.subr.bf16.mxu0 %v1210_v3  ;;  %v852_v4 = vpack.c.bf16 %v417_v1, %v416_v0  ;;  %854 = vmatprep.subr.bf16.mxu1 %v1210_v3  ;;  %v415_v5 = vld [vmem:[#allocation8 + $0x8] sm:$0xff]  ;;  %v418_v8 = vld [vmem:[#allocation9 + $0x10] sm:$0xff]  ;;  %vm493_vm1 = vcmask 130048   ;;  %v1504_v10 = vld [vmem:[%s356_s10] sm:$0xff]  ;;  %vm419_vm2 = vcmask 195584   ;;  %s1213_s26 = smov 96  }
  0xb2   : > { %v855_v6 = vpack.c.bf16 %v415_v5, %v414_v2  ;;  %848 = vmatprep.mubr.msk.f32.mxu1 %vm1211_vm0, %v1212_v7  ;;  %841 = vmatprep.mubr.msk.f32.mxu0 %vm1211_vm0, %v1212_v7  ;;  %v412_v9 = vld [vmem:[%s347_s15] sm:$0xff]  ;;  %vm584_vm3 = vcmask 261120   ;;  %s588_s23 = sld [smem:[#allocation11]]  ;;  %s824_s3 = sshll.u32 %s1282_s9, 7 }
  0xb3   : > { %853 = vmatpush3.bf16.msra.mxu0 %v852_v4  ;;  %v819_v13 = vld [vmem:[%s1605_s4] ss:$0 sm:$0xff]  ;;  %s404_s21 = scalar_lea.vmem [#allocation12], %s1476_s16  ;;  %s1522_s17 = scalar_lea.hbm %s1608_s7, %s824_s3 }
  0xb4   : > { %856 = vmatpush3.bf16.msra.mxu1 %v855_v6  ;;  %839 = vmatprep.subr.mxu0 %v1212_v7  ;;  %v820_v18 = vld [vmem:[%s1606_s5] ss:$0 sm:$0xff]  ;;  %s630_s19 = sshll.u32 %s404_s21, 4  ;;  %s612_s15 = scalar_lea.sflag [#allocation4], %s1473_s2  ;;  %s1524_s19 = int_to_ptr.vmem [resolvable:$true] %s630_s19 }
  0xb5   : > { %s1087_s13 = scalar_lea.vmem %s1524_s19, 128  ;;  %p1639_p2 = scmp.ne.s32.totalorder %s1629_s22, 0 }
  0xb6   : > { %p1088_p0 = scmp.ne.s32.totalorder %s1524_s19, %s1087_s13  ;;  %s1214_s12 = smov [#allocation12]  }
  0xb7   : > { %840 = vmatpush3.msra.mxu0 %v418_v8  ;;  %849 = vmatmul.mubr.msk.f32.vlgmr.msra.gmra.mrb[0].mxu1 %vm493_vm1, %v412_v9  ;;  %s1091_s10 = sshll.u32 %s1214_s12, 4  ;;  %s1092_s10 = int_to_ptr.vmem [resolvable:$false] %s1091_s10 }
  0xb8   : > { %842 = vmatmul.mubr.msk.f32.vlgmr.msra.gmra.mrb[0].mxu0 %vm419_vm2, %v1504_v10  ;;  %v589_v24 = vstv %s588_s23  ;;  %p1089_p4 = pnand %p1088_p0, %p1639_p2  ;;  %s1093_s11 = scalar_lea.vmem %s1092_s10, 256 }
  0xb9   : > { %p1094_p1 = scmp.lt.s32.totalorder %s1524_s19, %s1092_s10  ;;  %p1095_p6 = scmp.lt.s32.totalorder %s1093_s11, %s1087_s13 }
  0xba   : > { %p1090_p3 = pneg %p1089_p4 }
  0xbb   : > { %p1096_p12 = por %p1095_p6, %p1094_p1 }
  0xbd   : > { %p1097_p8 = pnand %p1096_p12, %p1090_p3 }
 0x18a   : > { %v563_v11 = vpop.f32.mrb[0].mxu1 }
 0x18b   : > { %v489_v12 = vpop.f32.mrb[0].mxu0  ;;  %v850_v14 = vpop.f32.mrb[1].mxu1 }
 0x18c   : > { %v564_v15 = vadd.f32 %v563_v11, %v489_v12  ;;  %v843_v16 = vpop.f32.mrb[1].mxu0 }
 0x18e   : > { %v574_v17 = vadd.f32 %v819_v13, %v564_v15 }
 0x190   : > { %950 = vtanh.f32 %v574_v17 }
 0x19a   : > { %v951_v19 = vpop.eup %950 }
 0x19b   : > { %v583_v20 = vmul.f32 %v951_v19, %v820_v18 }
 0x19d   : > { %592 = vrot.lane.b32.xlu0 %v583_v20, %s1213_s26  ;;  %v585_v21 = vsel %vm584_vm3, %v583_v20, 0.0 }
 0x1bc   : > { %586 = vadd.xlane.f32.xlu0 %v585_v21 }
 0x20f   : > { %v593_v22 = vpop.permute.xlu0 %592 }
 0x210   : > { %v595_v23 = vsel %vm584_vm3, %v593_v22, 0.0 }
 0x211   : > { %596 = vadd.xlane.f32.xlu1 %v595_v23 }
 0x249   : > { %v587_v25 = vpop.xlane.xlu0 %586 }
 0x24a   : > { %v590_v26 = vadd.f32 %v589_v24, %v587_v25 }
 0x24c   : > { %v601_v27 = vsub.f32 %v590_v26, %v590_v26 }
 0x24e   : > { %v602_v28 = vmul.f32 1.442695, %v601_v27 }
 0x250   : > { %952 = vpow2.f32 %v602_v28 }
 0x25a   : > { %v953_v29 = vpop.eup %952 }
 0x25b   : > { %v607_v30 = vmul.f32 %v953_v29, %v412_v9 }
 0x25d   : > { %608 = vst.msk [vmem:[%s404_s21] sm:$0xff] %vm493_vm1, %v607_v30 }
 0x25e   : > { %1100 = shalt.err (!%p1097_p8)
}
 0x25f   : > { %s1101_s24 = scalar_lea.hbm %s1522_s17, 128  ;;  %s1105_s26 = scalar_lea.hbm %s1608_s7, 256 }
 0x260   : > { %p1102_p11 = scmp.ne.s32.totalorder %s1522_s17, %s1101_s24  ;;  %p1106_p5 = scmp.lt.u32.totalorder %s1522_s17, %s1608_s7 }
 0x261   : > { %p1107_p9 = scmp.lt.u32.totalorder %s1105_s26, %s1101_s24  ;;  %p1109_p0 = scmp.lt.u32.totalorder %s1101_s24, %s1522_s17 }
 0x262   : > { %p1103_p7 = pnand %p1102_p11, %p1639_p2 }
 0x263   : > { %p1108_p13 = por %p1107_p9, %p1106_p5 }
 0x264   : > { %p1104_p10 = pneg %p1103_p7 }
 0x265   : > { %p1110_p4 = por %p1109_p0, %p1108_p13 }
 0x267   : > { %p1111_p3 = pnand %p1110_p4, %p1104_p10 }
 0x269   : > { %1114 = shalt.err (!%p1111_p3)
}
 0x26a   : > { %873 = dma.vmem_to_hbm [thread:$0]  (%p1639_p2), %s1524_s19, 128, %s1522_s17, %s612_s15  }
 0x26b   : > { %s821_s6 = sld [smem:[#allocation11 + $0x1]]  ;;  %s411_s20 = scalar_lea.vmem [#allocation13], %s1476_s16 }
 0x26c   : > { %s643_s13 = sshll.u32 %s411_s20, 4  ;;  %s1556_s11 = scalar_lea.hbm %s1609_s8, %s824_s3  ;;  %s1558_s13 = int_to_ptr.vmem [resolvable:$true] %s643_s13 }
 0x26d   : > { %s617_s19 = scalar_lea.sflag [#allocation14], %s1473_s2  ;;  %s1115_s17 = scalar_lea.vmem %s1558_s13, 128 }
 0x26e   : > { %p1116_p1 = scmp.ne.s32.totalorder %s1558_s13, %s1115_s17  ;;  %s1215_s16 = smov [#allocation13]  }
 0x26f   : > { %s1119_s9 = sshll.u32 %s1215_s16, 4  ;;  %s1120_s9 = int_to_ptr.vmem [resolvable:$false] %s1119_s9 }
 0x270   : > { %p1117_p6 = pnand %p1116_p1, %p1639_p2  ;;  %s1121_s15 = scalar_lea.vmem %s1120_s9, 256 }
 0x271   : > { %v599_v31 = vstv %s821_s6  ;;  %p1122_p8 = scmp.lt.s32.totalorder %s1558_s13, %s1120_s9  ;;  %p1123_p11 = scmp.lt.s32.totalorder %s1121_s15, %s1115_s17 }
 0x272   : > { %p1118_p12 = pneg %p1117_p6 }
 0x273   : > { %p1124_p7 = por %p1123_p11, %p1122_p8 }
 0x275   : > { %p1125_p10 = pnand %p1124_p7, %p1118_p12 }
 0x29e   : > { %v597_v32 = vpop.xlane.xlu1 %596 }
 0x29f   : > { %v600_v33 = vadd.f32 %v599_v31, %v597_v32 }
 0x2a1   : > { %v604_v34 = vsub.f32 %v600_v33, %v600_v33 }
 0x2a3   : > { %v605_v35 = vmul.f32 1.442695, %v604_v34 }
 0x2a5   : > { %954 = vpow2.f32 %v605_v35 }
 0x2af   : > { %v955_v36 = vpop.eup %954 }
 0x2b0   : > { %v609_v37 = vmul.f32 %v955_v36, %v1504_v10 }
 0x2b2   : > { %610 = vst.msk [vmem:[%s411_s20] sm:$0xff] %vm419_vm2, %v609_v37 }
 0x2b3   : > { %1128 = shalt.err (!%p1125_p10)
}
 0x2b4   : > { %s1129_s2 = scalar_lea.hbm %s1556_s11, 128  ;;  %s1133_s14 = scalar_lea.hbm %s1609_s8, 256 }
 0x2b5   : > { %p1130_p5 = scmp.ne.s32.totalorder %s1556_s11, %s1129_s2  ;;  %p1134_p0 = scmp.lt.u32.totalorder %s1556_s11, %s1609_s8 }
 0x2b6   : > { %p1135_p4 = scmp.lt.u32.totalorder %s1133_s14, %s1129_s2  ;;  %p1137_p1 = scmp.lt.u32.totalorder %s1129_s2, %s1556_s11 }
 0x2b7   : > { %p1131_p9 = pnand %p1130_p5, %p1639_p2 }
 0x2b8   : > { %p1136_p3 = por %p1135_p4, %p1134_p0 }
 0x2b9   : > { %p1132_p13 = pneg %p1131_p9 }
 0x2ba   : > { %p1138_p6 = por %p1137_p1, %p1136_p3 }
 0x2bc   : > { %p1139_p12 = pnand %p1138_p6, %p1132_p13 }
 0x2be   : > { %1142 = shalt.err (!%p1139_p12)
}
 0x2bf   : > { %874 = dma.vmem_to_hbm [thread:$0]  (%p1639_p2), %s1558_s13, 128, %s1556_s11, %s617_s19  }
 0x2c0 PF: > { %s1640_s23 = sld [smem:[#allocation22_spill]]  ;;  %s655_s21 = sand.u32 1, %s1189_s27  }
 0x2c1   : > { %p1642_p11 = scmp.ge.s32.totalorder %s1201_s30, 2  ;;  %s656_s6 = scalar_lea.sflag [#allocation4], %s655_s21 }
 0x2c6   : > { %p1641_p8 = scmp.ne.s32.totalorder %s1640_s23, 0 }
 0x2c8   : > { %p895_p7 = pnand %p1642_p11, %p1641_p8 }
 0x2ca   : > { %1180 = dma.done.wait (!%p895_p7), %s656_s6, 128  }
 0x2cb   : > { %1182 = vsyncadd (!%p895_p7), %s656_s6, 4294967168  ;;  %s665_s20 = scalar_lea.sflag [#allocation14], %s655_s21 }
 0x2cc   : > { %1184 = dma.done.wait (!%p895_p7), %s665_s20, 128  }
 0x2cd   : > { %1186 = vsyncadd (!%p895_p7), %s665_s20, 4294967168  ;;  %s1643_s22 = sld [smem:[#allocation23_spill]]  ;;  %p30_p2 = scmp.ge.s32.totalorder %s1385_s18, 4  }
 0x2ce   : > { %s1644_s27 = smov %s1193_s28  ;;  %s1645_s28 = smov %s1197_s29 }
 0x2cf   : > { %s1647_s30 = smov %s1385_s18  ;;  %32 = sbr.rel (!%p30_p2) target bundleno = 15 (0xf), region = 136 }
 0x2d3   : > { %s1646_s29 = smov %s1643_s22 }
 0x2d6   :  { %670 = vsyncpa [#allocation3], 1 }
 0x2d7   :  { %672 = vsyncpa [#allocation3 + $0x1], 1 }
 0x2d8   :  { %673 = vsyncpa [#allocation7], 1 }
 0x2d9   :  { %675 = vsyncpa [#allocation7 + $0x1], 1 }
 0x2da   :  { %676 = vsyncpa [#allocation10], 1 }
 0x2db   :  { %677 = vsyncpa [#allocation4], 1 }
 0x2dc   :  { %679 = vsyncpa [#allocation4 + $0x1], 1 }
 0x2dd   :  { %680 = vsyncpa [#allocation14], 1 }
 0x2de   :  { %682 = vsyncpa [#allocation14 + $0x1], 1 }
 0x2df   :  { %683 = vsyncpa [#allocation5], 1 }
 0x2e0   :  { %685 = vsyncpa [#allocation5 + $0x1], 1 }

</bundles_post_ra>
